<compile_context>
chip_gen: v7x
topology: tpu7x:2x2x1
jax: 0.10.0
libtpu: 0.0.40
codegen_flags: <defaults>
</compile_context>

<pallas_src>
import functools

import jax
import jax.numpy as jnp
from jax.experimental import pallas as pl
from jax.experimental.pallas import tpu as pltpu

LEAKY_SLOPE = 0.1
BN_EPS = 1e-5


# ---------------------------------------------------------------------------
# Kernel 1: [optional fused BN-affine + LeakyReLU on the input]  ->  3x3 conv
#           (single folded im2col MXU matmul)  ->  per-step BN partial stats.
# Layout: activations are (C, H*W) per batch item, spatial on lanes.
# ---------------------------------------------------------------------------
def _conv3x3_kernel(x_ref, w_ref, s_ref, b_ref, o_ref, sum_ref, ssq_ref,
                    *, H, W, preact, slope):
    HW = H * W
    Cin = x_ref.shape[1]

    x = x_ref[0]                                      # (Cin, HW)
    if preact:                                        # fused previous-BN affine + LeakyReLU
        x = x * s_ref[...] + b_ref[...]
        x = jnp.where(x >= 0, x, slope * x)

    # In-VMEM zero padding of one image row (+1 col) on each side: no HBM pad.
    zpad = jnp.zeros((Cin, W + 1), jnp.float32)
    xp = jnp.concatenate([zpad, x, zpad], axis=1)     # (Cin, HW + 2W + 2)

    # Left/right image-border validity masks (lane-wise).
    col = jax.lax.broadcasted_iota(jnp.int32, (1, HW), 1) % W
    not_first_col = col >= 1
    not_last_col = col <= W - 2

    # im2col: 9 statically shifted (masked) views folded into one K=9*Cin operand.
    taps = []
    for dh in (-1, 0, 1):
        for dw in (-1, 0, 1):
            start = (W + 1) + dh * W + dw
            t = xp[:, start:start + HW]               # (Cin, HW)
            if dw == -1:
                t = jnp.where(not_first_col, t, 0.0)
            elif dw == 1:
                t = jnp.where(not_last_col, t, 0.0)
            taps.append(t)
    patch = jnp.concatenate(taps, axis=0)             # (9*Cin, HW)

    # Single MXU matmul; output is lane-dense (spatial axis multiple of 128).
    acc = jnp.dot(w_ref[...], patch,
                  preferred_element_type=jnp.float32)  # (Cout, HW)

    o_ref[0] = acc.astype(o_ref.dtype)
    # Per-grid-step partial BatchNorm statistics (reduced in host glue).
    sum_ref[0] = jnp.sum(acc, axis=1, keepdims=True)
    ssq_ref[0] = jnp.sum(acc * acc, axis=1, keepdims=True)


def conv3x3(x, w_folded, scale, bias, H, W, *, preact, slope=LEAKY_SLOPE):
    """x: (N, Cin, H*W) f32; w_folded: (Cout, 9*Cin); scale/bias: (Cin,)."""
    N, Cin, HW = x.shape
    Cout = w_folded.shape[0]
    s = scale.reshape(Cin, 1).astype(jnp.float32)
    b = bias.reshape(Cin, 1).astype(jnp.float32)
    kernel = functools.partial(_conv3x3_kernel, H=H, W=W,
                               preact=preact, slope=slope)
    return pl.pallas_call(
        kernel,
        grid=(N,),
        in_specs=[
            pl.BlockSpec((1, Cin, HW), lambda n: (n, 0, 0)),
            pl.BlockSpec((Cout, 9 * Cin), lambda n: (0, 0)),
            pl.BlockSpec((Cin, 1), lambda n: (0, 0)),
            pl.BlockSpec((Cin, 1), lambda n: (0, 0)),
        ],
        out_specs=[
            pl.BlockSpec((1, Cout, HW), lambda n: (n, 0, 0)),
            pl.BlockSpec((1, Cout, 1), lambda n: (n, 0, 0)),
            pl.BlockSpec((1, Cout, 1), lambda n: (n, 0, 0)),
        ],
        out_shape=[
            jax.ShapeDtypeStruct((N, Cout, HW), jnp.float32),
            jax.ShapeDtypeStruct((N, Cout, 1), jnp.float32),
            jax.ShapeDtypeStruct((N, Cout, 1), jnp.float32),
        ],
        compiler_params=pltpu.CompilerParams(
            dimension_semantics=("parallel",)),  # partial stats => megacore-safe
    )(x, w_folded, s, b)


# ---------------------------------------------------------------------------
# Kernel 2: [optional last-BN affine on r] + residual add with [identity or
#           1x1-conv projection] shortcut, optionally followed by the fused
#           align_corners bilinear resize (as a matmul), plus partial stats.
# ---------------------------------------------------------------------------
def _res_add_kernel(r_ref, x_ref, s_ref, b_ref, wskip_ref, m_ref,
                    o_ref, sum_ref, ssq_ref, *, last_norm, project, resize):
    r = r_ref[0]                                      # (Cout, HW)
    if last_norm:                                     # fused bn2 affine
        r = r * s_ref[...] + b_ref[...]
    if project:                                       # 1x1-conv projection shortcut
        skip = jnp.dot(wskip_ref[...], x_ref[0],
                       preferred_element_type=jnp.float32)
    else:
        skip = x_ref[0]
    y = r + skip
    if resize:                                        # fused bilinear upsample
        y = jnp.dot(y, m_ref[...], preferred_element_type=jnp.float32)
    o_ref[0] = y.astype(o_ref.dtype)
    sum_ref[0] = jnp.sum(y, axis=1, keepdims=True)
    ssq_ref[0] = jnp.sum(y * y, axis=1, keepdims=True)


def residual_add(r, x, scale, bias, wskip, m, *, last_norm, project, resize):
    N, Cout, HW = r.shape
    Cx = x.shape[1]
    HWo = m.shape[1] if resize else HW
    s = scale.reshape(Cout, 1).astype(jnp.float32)
    b = bias.reshape(Cout, 1).astype(jnp.float32)
    kernel = functools.partial(_res_add_kernel, last_norm=last_norm,
                               project=project, resize=resize)
    return pl.pallas_call(
        kernel,
        grid=(N,),
        in_specs=[
            pl.BlockSpec((1, Cout, HW), lambda n: (n, 0, 0)),
            pl.BlockSpec((1, Cx, HW), lambda n: (n, 0, 0)),
            pl.BlockSpec((Cout, 1), lambda n: (0, 0)),
            pl.BlockSpec((Cout, 1), lambda n: (0, 0)),
            pl.BlockSpec(wskip.shape, lambda n: (0, 0)),
            pl.BlockSpec(m.shape, lambda n: (0, 0)),
        ],
        out_specs=[
            pl.BlockSpec((1, Cout, HWo), lambda n: (n, 0, 0)),
            pl.BlockSpec((1, Cout, 1), lambda n: (n, 0, 0)),
            pl.BlockSpec((1, Cout, 1), lambda n: (n, 0, 0)),
        ],
        out_shape=[
            jax.ShapeDtypeStruct((N, Cout, HWo), jnp.float32),
            jax.ShapeDtypeStruct((N, Cout, 1), jnp.float32),
            jax.ShapeDtypeStruct((N, Cout, 1), jnp.float32),
        ],
        compiler_params=pltpu.CompilerParams(
            dimension_semantics=("parallel",)),
    )(r, x, s, b, wskip, m)


# ---------------------------------------------------------------------------
# Tiny host glue: weight folding, BN scale/bias from partial stats, resize mat.
# ---------------------------------------------------------------------------
def _fold3x3(w):
    """PyTorch (Cout, Cin, 3, 3) -> (Cout, 9*Cin); K index = (kh*3+kw)*Cin + ci."""
    cout, cin = w.shape[0], w.shape[1]
    return jnp.transpose(w, (0, 2, 3, 1)).reshape(cout, 9 * cin)


def _bn_affine(psum, pssq, count, gamma, beta, eps=BN_EPS):
    """Fold training-mode BatchNorm (batch stats, biased var) into scale/bias."""
    csum = jnp.sum(psum[:, :, 0], axis=0)
    cssq = jnp.sum(pssq[:, :, 0], axis=0)
    mean = csum / count
    var = jnp.maximum(cssq / count - mean * mean, 0.0)   # clamp single-pass var
    scale = gamma / jnp.sqrt(var + eps)
    bias = beta - mean * scale
    return scale, bias
    # TODO(synk): running_mean/running_var (momentum) buffer updates are
    # stateful bookkeeping only and do not affect the forward output; omitted.


def _interp_weights(n_in, n_out):
    """1-D bilinear interpolation matrix, align_corners=True: (n_out, n_in)."""
    if n_out == 1:
        src = jnp.zeros((1,), jnp.float32)
    else:
        src = jnp.arange(n_out, dtype=jnp.float32) * (n_in - 1) / (n_out - 1)
    lo = jnp.clip(jnp.floor(src).astype(jnp.int32), 0, n_in - 1)
    hi = jnp.clip(lo + 1, 0, n_in - 1)
    frac = src - lo.astype(jnp.float32)
    a = jnp.zeros((n_out, n_in), jnp.float32)
    rows = jnp.arange(n_out)
    a = a.at[rows, lo].add(1.0 - frac)
    a = a.at[rows, hi].add(frac)
    return a


def _bilinear_matrix(h_in, w_in, h_out, w_out):
    """(h_in*w_in, h_out*w_out): y_flat = x_flat @ M, per channel."""
    ah = _interp_weights(h_in, h_out)
    aw = _interp_weights(w_in, w_out)
    return jnp.kron(ah, aw).T


# ---------------------------------------------------------------------------
# PreactBasicResidualBlock (assumed structure, see header TODO).
# Activations flow as (N, C, H*W).  Returns (out, partial-stats of out).
# ---------------------------------------------------------------------------
def preact_residual_block(x, x_stats, p, H, W, *, add_preact, add_last_norm,
                          resize_mat=None, slope=LEAKY_SLOPE, eps=BN_EPS):
    N, Cin, HW = x.shape
    Cout = p["w1"].shape[0]
    count = N * HW

    if add_preact:
        s0, b0 = _bn_affine(*x_stats, count, p["g0"], p["b0"], eps)
    else:
        s0 = jnp.ones((Cin,), jnp.float32)
        b0 = jnp.zeros((Cin,), jnp.float32)

    # conv1 (with preact fused into its input side when requested)
    r1, ps1, pq1 = conv3x3(x, _fold3x3(p["w1"]), s0, b0, H, W,
                           preact=add_preact, slope=slope)
    # bn1 + LeakyReLU fused into conv2's input side
    s1, b1 = _bn_affine(ps1, pq1, count, p["g1"], p["b1"], eps)
    r2, ps2, pq2 = conv3x3(r1, _fold3x3(p["w2"]), s1, b1, H, W,
                           preact=True, slope=slope)

    if add_last_norm:
        s2, b2 = _bn_affine(ps2, pq2, count, p["g2"], p["b2"], eps)
    else:
        s2 = jnp.ones((Cout,), jnp.float32)
        b2 = jnp.zeros((Cout,), jnp.float32)

    project = "wskip" in p
    wskip = p["wskip"] if project else jnp.zeros((1, 1), jnp.float32)
    m = resize_mat if resize_mat is not None else jnp.zeros((1, 1), jnp.float32)
    out, pso, pqo = residual_add(r2, x, s2, b2, wskip, m,
                                 last_norm=add_last_norm, project=project,
                                 resize=resize_mat is not None)
    return out, (pso, pqo)


# ---------------------------------------------------------------------------
# RefineInBlock forward.
# ---------------------------------------------------------------------------
def refine_in_block(disparity, matchability, cost_volume, params, *,
                    in_scale, out_scale):
    del cost_volume  # third input is unused by the reference forward ("_")
    x = jnp.concatenate([disparity, matchability], axis=1).astype(jnp.float32)
    N, C, H, W = x.shape
    x = x.reshape(N, C, H * W)  # channel-major, spatial on lanes (free view)

    h, st = preact_residual_block(x, None, params["disp_block1"], H, W,
                                  add_preact=False, add_last_norm=False)

    sf = in_scale / out_scale
    Ho, Wo = int(H * sf), int(W * sf)
    m = _bilinear_matrix(H, W, Ho, Wo)
    # bilinear resize fused into disp_block2's residual-add kernel
    h, _ = preact_residual_block(h, st, params["disp_block2"], H, W,
                                 add_preact=True, add_last_norm=True,
                                 resize_mat=m)

    h, st = preact_residual_block(h, None, params["out_block1"], Ho, Wo,
                                  add_preact=False, add_last_norm=False)
    h, _ = preact_residual_block(h, st, params["out_block2"], Ho, Wo,
                                 add_preact=True, add_last_norm=True)

    return h.reshape(N, h.shape[1], Ho, Wo)


def init_params(key, out_channels):
    mid = out_channels // 2
    ks = list(jax.random.split(key, 10))

    def conv(k, cout, cin):
        return 0.1 * jax.random.normal(k, (cout, cin, 3, 3), jnp.float32)

    ones = lambda c: jnp.ones((c,), jnp.float32)
    zeros = lambda c: jnp.zeros((c,), jnp.float32)

    return {
        # 2 -> mid ; add_preact=False, add_last_norm=False, projection shortcut
        "disp_block1": {
            "w1": conv(ks[0], mid, 2), "g1": ones(mid), "b1": zeros(mid),
            "w2": conv(ks[1], mid, mid),
            "wskip": 0.1 * jax.random.normal(ks[2], (mid, 2), jnp.float32),
        },
        # mid -> out ; add_preact=True, add_last_norm=True, projection shortcut
        "disp_block2": {
            "g0": ones(mid), "b0": zeros(mid),
            "w1": conv(ks[3], out_channels, mid),
            "g1": ones(out_channels), "b1": zeros(out_channels),
            "w2": conv(ks[4], out_channels, out_channels),
            "g2": ones(out_channels), "b2": zeros(out_channels),
            "wskip": 0.1 * jax.random.normal(ks[5], (out_channels, mid),
                                             jnp.float32),
        },
        # out -> out ; identity shortcut
        "out_block1": {
            "w1": conv(ks[6], out_channels, out_channels),
            "g1": ones(out_channels), "b1": zeros(out_channels),
            "w2": conv(ks[7], out_channels, out_channels),
        },
        "out_block2": {
            "g0": ones(out_channels), "b0": zeros(out_channels),
            "w1": conv(ks[8], out_channels, out_channels),
            "g1": ones(out_channels), "b1": zeros(out_channels),
            "w2": conv(ks[9], out_channels, out_channels),
            "g2": ones(out_channels), "b2": zeros(out_channels),
        },
    }


if __name__ == "__main__":
    key = jax.random.PRNGKey(0)
    kd, km, kp = jax.random.split(key, 3)

    N, H, W = 2, 16, 16
    out_channels = 16
    in_scale, out_scale = 2.0, 1.0   # scale_factor = 2

    disparity = jax.random.normal(kd, (N, 1, H, W), jnp.float32)
    matchability = jax.random.normal(km, (N, 1, H, W), jnp.float32)
    params = init_params(kp, out_channels)

    y = refine_in_block(disparity, matchability, None, params,
                        in_scale=in_scale, out_scale=out_scale)
    y = jax.block_until_ready(y)

    assert y.shape == (N, out_channels, H * 2, W * 2), y.shape
    assert bool(jnp.all(jnp.isfinite(y)))
    print("KERNEL_OK")
</pallas_src>

<mosaic_0001>
module attributes {stable_mosaic.version = 11 : i64} {
  func.func @_conv3x3_kernel(%arg0: i32, %arg1: memref<1x2x256xf32, #tpu.memory_space<vmem>>, %arg2: memref<8x18xf32, #tpu.memory_space<vmem>>, %arg3: memref<2x1xf32, #tpu.memory_space<vmem>>, %arg4: memref<2x1xf32, #tpu.memory_space<vmem>>, %arg5: memref<1x8x256xf32, #tpu.memory_space<vmem>>, %arg6: memref<1x8x1xf32, #tpu.memory_space<vmem>>, %arg7: memref<1x8x1xf32, #tpu.memory_space<vmem>>) attributes {dimension_semantics = [#tpu.dimension_semantics<parallel>], iteration_bounds = array<i64: 2>, scalar_prefetch = 0 : i64, scratch_operands = 0 : i64, tpu.core_type = #tpu.core_type<tc>, window_params = [{transform_indices = @transform_0, window_bounds = array<i64: 1, 2, 256>}, {pipeline_mode = #tpu.pipeline_mode<synchronous>, transform_indices = @transform_1, window_bounds = array<i64: 8, 18>}, {pipeline_mode = #tpu.pipeline_mode<synchronous>, transform_indices = @transform_2, window_bounds = array<i64: 2, 1>}, {pipeline_mode = #tpu.pipeline_mode<synchronous>, transform_indices = @transform_3, window_bounds = array<i64: 2, 1>}, {transform_indices = @transform_4, window_bounds = array<i64: 1, 8, 256>}, {transform_indices = @transform_5, window_bounds = array<i64: 1, 8, 1>}, {transform_indices = @transform_6, window_bounds = array<i64: 1, 8, 1>}]} {
    %c0 = arith.constant 0 : index
    %c0_0 = arith.constant 0 : index
    %c0_1 = arith.constant 0 : index
    %0 = vector.load %arg1[%c0, %c0_0, %c0_1] : memref<1x2x256xf32, #tpu.memory_space<vmem>>, vector<1x2x256xf32>
    %1 = vector.shape_cast %0 : vector<1x2x256xf32> to vector<2x256xf32>
    %cst = arith.constant 0.000000e+00 : f32
    %2 = vector.broadcast %cst : f32 to vector<2x17xf32>
    %3 = tpu.concatenate %2, %1, %2 in 1 : vector<2x17xf32>, vector<2x256xf32>, vector<2x17xf32> -> vector<2x290xf32>
    %4 = tpu.iota {dimensions = array<i32: 1>} : vector<1x256xi32>
    %c16_i32 = arith.constant 16 : i32
    %c0_i32 = arith.constant 0 : i32
    %5 = arith.cmpi eq, %c16_i32, %c0_i32 : i32
    %c1_i32 = arith.constant 1 : i32
    %6 = arith.select %5, %c1_i32, %c16_i32 : i32
    %7 = vector.broadcast %6 : i32 to vector<1x256xi32>
    %8 = arith.remsi %4, %7 : vector<1x256xi32>
    %c0_i32_2 = arith.constant 0 : i32
    %9 = vector.broadcast %c0_i32_2 : i32 to vector<1x256xi32>
    %10 = arith.cmpi ne, %8, %9 : vector<1x256xi32>
    %c0_i32_3 = arith.constant 0 : i32
    %11 = vector.broadcast %c0_i32_3 : i32 to vector<1x256xi32>
    %12 = arith.cmpi slt, %8, %11 : vector<1x256xi32>
    %c0_i32_4 = arith.constant 0 : i32
    %13 = arith.cmpi slt, %6, %c0_i32_4 : i32
    %14 = vector.broadcast %13 : i1 to vector<1x256xi1>
    %15 = vector.broadcast %14 : vector<1x256xi1> to vector<1x256xi1>
    %16 = arith.xori %12, %15 : vector<1x256xi1>
    %17 = arith.andi %16, %10 : vector<1x256xi1>
    %18 = vector.broadcast %6 : i32 to vector<1x256xi32>
    %19 = arith.addi %8, %18 : vector<1x256xi32>
    %20 = arith.select %17, %19, %8 : vector<1x256xi1>, vector<1x256xi32>
    %c1_i32_5 = arith.constant 1 : i32
    %21 = vector.broadcast %c1_i32_5 : i32 to vector<1x256xi32>
    %22 = arith.cmpi sge, %20, %21 : vector<1x256xi32>
    %c14_i32 = arith.constant 14 : i32
    %23 = vector.broadcast %c14_i32 : i32 to vector<1x256xi32>
    %24 = arith.cmpi sle, %20, %23 : vector<1x256xi32>
    %25 = vector.extract_strided_slice %3 {offsets = [0, 0], sizes = [2, 256], strides = [1, 1]} : vector<2x290xf32> to vector<2x256xf32>
    %cst_6 = arith.constant 0.000000e+00 : f32
    %26 = vector.shape_cast %22 : vector<1x256xi1> to vector<1x256xi1>
    %27 = vector.broadcast %26 : vector<1x256xi1> to vector<2x256xi1>
    %28 = vector.broadcast %cst_6 : f32 to vector<2x256xf32>
    %29 = arith.select %27, %25, %28 : vector<2x256xi1>, vector<2x256xf32>
    %30 = vector.extract_strided_slice %3 {offsets = [0, 1], sizes = [2, 256], strides = [1, 1]} : vector<2x290xf32> to vector<2x256xf32>
    %31 = vector.extract_strided_slice %3 {offsets = [0, 2], sizes = [2, 256], strides = [1, 1]} : vector<2x290xf32> to vector<2x256xf32>
    %cst_7 = arith.constant 0.000000e+00 : f32
    %32 = vector.shape_cast %24 : vector<1x256xi1> to vector<1x256xi1>
    %33 = vector.broadcast %32 : vector<1x256xi1> to vector<2x256xi1>
    %34 = vector.broadcast %cst_7 : f32 to vector<2x256xf32>
    %35 = arith.select %33, %31, %34 : vector<2x256xi1>, vector<2x256xf32>
    %36 = vector.extract_strided_slice %3 {offsets = [0, 16], sizes = [2, 256], strides = [1, 1]} : vector<2x290xf32> to vector<2x256xf32>
    %cst_8 = arith.constant 0.000000e+00 : f32
    %37 = vector.shape_cast %22 : vector<1x256xi1> to vector<1x256xi1>
    %38 = vector.broadcast %37 : vector<1x256xi1> to vector<2x256xi1>
    %39 = vector.broadcast %cst_8 : f32 to vector<2x256xf32>
    %40 = arith.select %38, %36, %39 : vector<2x256xi1>, vector<2x256xf32>
    %41 = vector.extract_strided_slice %3 {offsets = [0, 17], sizes = [2, 256], strides = [1, 1]} : vector<2x290xf32> to vector<2x256xf32>
    %42 = vector.extract_strided_slice %3 {offsets = [0, 18], sizes = [2, 256], strides = [1, 1]} : vector<2x290xf32> to vector<2x256xf32>
    %cst_9 = arith.constant 0.000000e+00 : f32
    %43 = vector.shape_cast %24 : vector<1x256xi1> to vector<1x256xi1>
    %44 = vector.broadcast %43 : vector<1x256xi1> to vector<2x256xi1>
    %45 = vector.broadcast %cst_9 : f32 to vector<2x256xf32>
    %46 = arith.select %44, %42, %45 : vector<2x256xi1>, vector<2x256xf32>
    %47 = vector.extract_strided_slice %3 {offsets = [0, 32], sizes = [2, 256], strides = [1, 1]} : vector<2x290xf32> to vector<2x256xf32>
    %cst_10 = arith.constant 0.000000e+00 : f32
    %48 = vector.shape_cast %22 : vector<1x256xi1> to vector<1x256xi1>
    %49 = vector.broadcast %48 : vector<1x256xi1> to vector<2x256xi1>
    %50 = vector.broadcast %cst_10 : f32 to vector<2x256xf32>
    %51 = arith.select %49, %47, %50 : vector<2x256xi1>, vector<2x256xf32>
    %52 = vector.extract_strided_slice %3 {offsets = [0, 33], sizes = [2, 256], strides = [1, 1]} : vector<2x290xf32> to vector<2x256xf32>
    %53 = vector.extract_strided_slice %3 {offsets = [0, 34], sizes = [2, 256], strides = [1, 1]} : vector<2x290xf32> to vector<2x256xf32>
    %cst_11 = arith.constant 0.000000e+00 : f32
    %54 = vector.shape_cast %24 : vector<1x256xi1> to vector<1x256xi1>
    %55 = vector.broadcast %54 : vector<1x256xi1> to vector<2x256xi1>
    %56 = vector.broadcast %cst_11 : f32 to vector<2x256xf32>
    %57 = arith.select %55, %53, %56 : vector<2x256xi1>, vector<2x256xf32>
    %58 = tpu.concatenate %29, %30, %35, %40, %41, %46, %51, %52, %57 in 0 : vector<2x256xf32>, vector<2x256xf32>, vector<2x256xf32>, vector<2x256xf32>, vector<2x256xf32>, vector<2x256xf32>, vector<2x256xf32>, vector<2x256xf32>, vector<2x256xf32> -> vector<18x256xf32>
    %c0_12 = arith.constant 0 : index
    %c0_13 = arith.constant 0 : index
    %59 = vector.load %arg2[%c0_12, %c0_13] : memref<8x18xf32, #tpu.memory_space<vmem>>, vector<8x18xf32>
    %cst_14 = arith.constant dense<0.000000e+00> : vector<8x256xf32>
    %60 = tpu.matmul %59, %58, %cst_14 {dimension_numbers = #tpu.dot_dimension_numbers<[1], [0], [0], [1], [0, 0, 1, 1], [], []>} : vector<8x18xf32>, vector<18x256xf32>, vector<8x256xf32> -> vector<8x256xf32>
    %c0_15 = arith.constant 0 : index
    %c0_16 = arith.constant 0 : index
    %c0_17 = arith.constant 0 : index
    %61 = vector.load %arg5[%c0_15, %c0_16, %c0_17] : memref<1x8x256xf32, #tpu.memory_space<vmem>>, vector<1x8x256xf32>
    %62 = vector.shape_cast %61 : vector<1x8x256xf32> to vector<8x256xf32>
    %63 = vector.shape_cast %60 : vector<8x256xf32> to vector<1x8x256xf32>
    tpu.vector_store %arg5[%c0_15, %c0_16, %c0_17], %63 {strides = array<i32>} : memref<1x8x256xf32, #tpu.memory_space<vmem>>, vector<1x8x256xf32>,
    %cst_18 = arith.constant dense<0.000000e+00> : vector<8xf32>
    %64 = vector.multi_reduction <add>, %60, %cst_18 [1] : vector<8x256xf32> to vector<8xf32>
    %65 = vector.shape_cast %64 : vector<8xf32> to vector<8x1xf32>
    %c0_19 = arith.constant 0 : index
    %c0_20 = arith.constant 0 : index
    %c0_21 = arith.constant 0 : index
    %66 = vector.load %arg6[%c0_19, %c0_20, %c0_21] : memref<1x8x1xf32, #tpu.memory_space<vmem>>, vector<1x8x1xf32>
    %67 = vector.shape_cast %66 : vector<1x8x1xf32> to vector<8x1xf32>
    %68 = vector.shape_cast %65 : vector<8x1xf32> to vector<1x8x1xf32>
    tpu.vector_store %arg6[%c0_19, %c0_20, %c0_21], %68 {strides = array<i32>} : memref<1x8x1xf32, #tpu.memory_space<vmem>>, vector<1x8x1xf32>,
    %69 = arith.mulf %60, %60 : vector<8x256xf32>
    %cst_22 = arith.constant dense<0.000000e+00> : vector<8xf32>
    %70 = vector.multi_reduction <add>, %69, %cst_22 [1] : vector<8x256xf32> to vector<8xf32>
    %71 = vector.shape_cast %70 : vector<8xf32> to vector<8x1xf32>
    %c0_23 = arith.constant 0 : index
    %c0_24 = arith.constant 0 : index
    %c0_25 = arith.constant 0 : index
    %72 = vector.load %arg7[%c0_23, %c0_24, %c0_25] : memref<1x8x1xf32, #tpu.memory_space<vmem>>, vector<1x8x1xf32>
    %73 = vector.shape_cast %72 : vector<1x8x1xf32> to vector<8x1xf32>
    %74 = vector.shape_cast %71 : vector<8x1xf32> to vector<1x8x1xf32>
    tpu.vector_store %arg7[%c0_23, %c0_24, %c0_25], %74 {strides = array<i32>} : memref<1x8x1xf32, #tpu.memory_space<vmem>>, vector<1x8x1xf32>,
    return
  }
  func.func @transform_0(%arg0: i32) -> (i32, i32, i32) {
    %c0_i32 = arith.constant 0 : i32
    %c0_i32_0 = arith.constant 0 : i32
    %c0_i32_1 = arith.constant 0 : i32
    return %arg0, %c0_i32, %c0_i32_0 : i32, i32, i32
  }
  func.func @transform_1(%arg0: i32) -> (i32, i32) {
    %c0_i32 = arith.constant 0 : i32
    %c0_i32_0 = arith.constant 0 : i32
    %c0_i32_1 = arith.constant 0 : i32
    return %c0_i32, %c0_i32_0 : i32, i32
  }
  func.func @transform_2(%arg0: i32) -> (i32, i32) {
    %c0_i32 = arith.constant 0 : i32
    %c0_i32_0 = arith.constant 0 : i32
    %c0_i32_1 = arith.constant 0 : i32
    return %c0_i32, %c0_i32_0 : i32, i32
  }
  func.func @transform_3(%arg0: i32) -> (i32, i32) {
    %c0_i32 = arith.constant 0 : i32
    %c0_i32_0 = arith.constant 0 : i32
    %c0_i32_1 = arith.constant 0 : i32
    return %c0_i32, %c0_i32_0 : i32, i32
  }
  func.func @transform_4(%arg0: i32) -> (i32, i32, i32) {
    %c0_i32 = arith.constant 0 : i32
    %c0_i32_0 = arith.constant 0 : i32
    %c0_i32_1 = arith.constant 0 : i32
    return %arg0, %c0_i32, %c0_i32_0 : i32, i32, i32
  }
  func.func @transform_5(%arg0: i32) -> (i32, i32, i32) {
    %c0_i32 = arith.constant 0 : i32
    %c0_i32_0 = arith.constant 0 : i32
    %c0_i32_1 = arith.constant 0 : i32
    return %arg0, %c0_i32, %c0_i32_0 : i32, i32, i32
  }
  func.func @transform_6(%arg0: i32) -> (i32, i32, i32) {
    %c0_i32 = arith.constant 0 : i32
    %c0_i32_0 = arith.constant 0 : i32
    %c0_i32_1 = arith.constant 0 : i32
    return %arg0, %c0_i32, %c0_i32_0 : i32, i32, i32
  }
}

</mosaic_0001>

<bundles_post_ra>
// kernel: tpu_custom_call.1
= control target key start
LH: loop header
LB: loop body
LE: loop exit
PB: predicated region body
PF: predicated region fallthrough
CT: control target
= control target key end

     0   :  { %12 = vsyncpa [#allocation3], 0  ;;  %s1253_s0 = inlined_call_operand.hbm [shape: f32[2,2,256], index: 0, kind: input, shape index: {}]   ;;  %s1254_s1 = inlined_call_operand.vmem [shape: f32[8,18], index: 1, kind: input, shape index: {}]   ;;  %s1255_s2 = inlined_call_operand.vmem [shape: f32[2,1], index: 2, kind: input, shape index: {}]   ;;  %s1256_s3 = inlined_call_operand.vmem [shape: f32[2,1], index: 3, kind: input, shape index: {}]   ;;  %s1257_s4 = inlined_call_operand.hbm [shape: f32[2,8,256], index: 4, kind: output, shape index: {0}]   ;;  %s1258_s5 = inlined_call_operand.vmem [shape: f32[2,8,1], index: 5, kind: output, shape index: {1}]   ;;  %s1259_s6 = inlined_call_operand.vmem [shape: f32[2,8,1], index: 6, kind: output, shape index: {2}]  }
   0x1   :  { %14 = vsyncpa [#allocation3 + $0x1], 0 }
   0x2   :  { %15 = vsyncpa [#allocation4], 0 }
   0x3   :  { %17 = vsyncpa [#allocation4 + $0x1], 0  ;;  %s1000_s21 = smov 0   ;;  %s1002_s22 = smov 0  }
   0x4   :  { %s1004_s2 = smov 0   ;;  %s1006_s3 = smov 0  }
   0x5 LB: > { %s1021_s23 = sadd.s32 4294967295, %s951_s3   ;;  %s738_s24 = sadd.s32 4294967294, %s951_s3   ;;  %s951_s3 = sphi %s1006_s3, %s1282_s3   ;;  %s947_s2 = sphi %s1004_s2, %s1281_s2   ;;  %s943_s22 = sphi %s1002_s22, %s1280_s22   ;;  %s939_s21 = sphi %s1000_s21, %s1279_s21  }
   0x6   : > { %s1025_s25 = sadd.s32 1, %s951_s3   ;;  %s30_s26 = sadd.s32 1, %s947_s2 }
   0x7   : > { %s27_s27 = ssub.s32 %s951_s3, %s1025_s25  ;;  %p37_p0 = scmp.ne.s32.totalorder %s947_s2, %s943_s22 }
   0x8   : > { %p28_p1 = scmp.eq.s32.totalorder %s27_s27, 0  ;;  %p38_p2 = scmp.eq.s32.totalorder %s951_s3, 0 }
   0x9   : > { %p43_p3 = scmp.ne.s32.totalorder %s943_s22, %s939_s21  ;;  %p44_p4 = scmp.eq.s32.totalorder %s1021_s23, 0 }
   0xa   : > { %s1037_s28 = scalar_select %p28_p1, %s947_s2, %s30_s26  }
   0xb   : > { %p1039_p5 = por %p38_p2, %p37_p0  ;;  %p1043_p6 = por %p44_p4, %p43_p3 }
   0xc   : > { %p130_p7 = scmp.eq.s32.totalorder %s1021_s23, 1  ;;  %p136_p8 = scmp.eq.s32.totalorder %s738_s24, 1 }
   0xd   : > { %p776_p10 = scmp.lt.s32.totalorder %s951_s3, 2  ;;  %s217_s9 = sand.u32 1, %s947_s2  }
   0xe   : > { %p1050_p11 = por %p130_p7, %p37_p0  ;;  %p1054_p12 = por %p136_p8, %p43_p3 }
   0xf   : > { %s758_s10 = sshll.u32 %s951_s3, 6  ;;  %s741_s11 = sshll.u32 %s217_s9, 2 }
  0x10   : > { %s1263_s7 = scalar_select %p1050_p11, 1, 0 }
  0x11   : > { %s1264_s8 = scalar_select %p1054_p12, 1, 0 }
  0x12   : > { %s1063_s14 = scalar_lea.hbm %s1253_s0, %s758_s10  ;;  %s221_s15 = scalar_lea.vmem [#allocation2], %s741_s11 }
  0x13   : > { %s229_s16 = sshll.u32 %s221_s15, 4  ;;  %p1067_p13 = pnand %p776_p10, %p1039_p5  ;;  %s1071_s16 = int_to_ptr.vmem [resolvable:$true] %s229_s16 }
  0x14   : > { %s218_s18 = scalar_lea.sflag [#allocation3], %s217_s9  ;;  %s855_s19 = scalar_lea.hbm %s1063_s14, 64 }
  0x15   : > { %p856_p2 = scmp.ne.s32.totalorder %s1063_s14, %s855_s19  ;;  %p857_p3 = pneg %p1067_p13 }
  0x16   : > { %s860_s26 = scalar_lea.hbm %s1253_s0, 128  ;;  %p861_p5 = scmp.lt.u32.totalorder %s1063_s14, %s1253_s0 }
  0x17   : > { %p858_p4 = pnand %p857_p3, %p856_p2  ;;  %p862_p8 = scmp.lt.u32.totalorder %s860_s26, %s855_s19 }
  0x18   : > { %p864_p9 = scmp.lt.u32.totalorder %s855_s19, %s1063_s14 }
  0x19   : > { %p859_p7 = pneg %p858_p4  ;;  %p863_p10 = por %p862_p8, %p861_p5 }
  0x1b   : > { %p865_p0 = por %p864_p9, %p863_p10 }
  0x1d   : > { %p866_p1 = pnand %p865_p0, %p859_p7 }
  0x1f   : > { %869 = shalt.err (!%p866_p1)
}
  0x20   : > { %s870_s9 = scalar_lea.vmem %s1071_s16, 64  ;;  %s953_s10 = smov [#allocation2]  }
  0x21   : > { %p871_p2 = scmp.ne.s32.totalorder %s1071_s16, %s870_s9  ;;  %s875_s11 = sshll.u32 %s953_s10, 4  ;;  %s876_s11 = int_to_ptr.vmem [resolvable:$false] %s875_s11 }
  0x22   : > { %s877_s12 = scalar_lea.vmem %s876_s11, 128  ;;  %p878_p11 = scmp.lt.s32.totalorder %s1071_s16, %s876_s11 }
  0x23   : > { %p873_p4 = pnand %p871_p2, %p857_p3  ;;  %p879_p5 = scmp.lt.s32.totalorder %s877_s12, %s870_s9 }
  0x25   : > { %p874_p12 = pneg %p873_p4  ;;  %p880_p8 = por %p879_p5, %p878_p11 }
  0x27   : > { %p881_p9 = pnand %p880_p8, %p874_p12 }
  0x29   : > { %884 = shalt.err (!%p881_p9)
}
  0x2a   : > { %771 = dma.hbm_to_vmem [thread:$0]  (!%p1067_p13), %s1063_s14, 64, %s1071_s16, %s218_s18  }
  0x2b   : > { %p1266_p0 = scmp.lt.s32.totalorder %s951_s3, 3  ;;  %p1267_p1 = scmp.ge.s32.totalorder %s951_s3, 1 }
  0x2d   : > { %p235_p3 = pnand %p1267_p1, %p1266_p0 }
  0x2e   : > { %s1105_s13 = sand.u32 (!%p235_p3), 1, %s943_s22  }
  0x2f   : > { %238 = sbr.rel (%p235_p3) target bundleno = 685 (0x2ad), region = 36  ;;  %s745_s15 = sshll.u32 (!%p235_p3), %s1105_s13, 2 }
  0x30   : > { %s241_s19 = scalar_lea.sflag (!%p235_p3), [#allocation3], %s1105_s13  ;;  %s244_s20 = scalar_lea.vmem (!%p235_p3), [#allocation2], %s745_s15 }
  0x36   : > { %930 = dma.done.wait (%p1043_p6), %s241_s19, 64  }
  0x37   : > { %932 = vsyncadd (%p1043_p6), %s241_s19, 4294967232  ;;  %v749_v0 = vld.sshfl [vmem:[%s244_s20] sm:$0x33 pattern:$0x76325410]  ;;  %s954_s14 = smov 17   ;;  %v310_v19 = vlaneseq }
  0x38   : > { %299 = vrot.lane.b32.xlu0 %v749_v0, %s954_s14  ;;  %v298_v1 = vcombine.high %v749_v0, %v749_v0  ;;  %vm303_vm0 = vcmask 138240   ;;  %s955_s16 = smov 112   ;;  %s956_s17 = smov 110   ;;  %v963_v15 = vmov 0.0   ;;  %vm385_vm2 = vcmask 900096  }
  0x39   : > { %s957_s30 = smov 111   ;;  %s958_s18 = smov 126   ;;  %571 = vmatprep.mubr.f32.mxu0 %v963_v15  ;;  %v311_v22 = vand.u32 127, %v310_v19  ;;  %vm359_vm3 = vcmask 1031168   ;;  %vm398_vm7 = vcmask 785408   ;;  %vm427_vm8 = vcmask 1039360  }
  0x3a   : > { %s959_s24 = smov 96   ;;  %s960_s26 = smov 127   ;;  %vm372_vm9 = vcmask 916480   ;;  %vm450_vm10 = vcmask 908288   ;;  %vm481_vm11 = vcmask 1041408   ;;  %vm484_vm12 = vcmask 1043456  }
  0x3b   : > { %s961_s27 = smov 95   ;;  %s962_s29 = smov 94   ;;  %v312_v23 = vadd.s32 128, %v311_v22  ;;  %v317_v26 = vand.u32 15, %v311_v22  ;;  %vm476_vm13 = vcmask 777216   ;;  %vm487_vm14 = vcmask 1045504  }
  0x3c   : > { %301 = vrot.lane.b32.xlu0 %v298_v1, %s954_s14  ;;  %vm411_vm15 = vcmask 769024   ;;  %s746_s11 = sshll.u32 %s1105_s13, 4  ;;  %s759_s19 = sshll.u32 %s1021_s23, 8 }
  0x3d   : > { %v324_v27 = vand.u32 15, %v312_v23  ;;  %vm1131_vm1 = vcmp.ge.s32.totalorder %v317_v26, 1  ;;  %vm1135_vm4 = vcmp.le.s32.totalorder %v317_v26, 14  ;;  %s268_s12 = scalar_lea.vmem [#allocation5], %s746_s11  ;;  %p1276_p11 = scmp.ne.s32.totalorder %s1263_s7, 0 }
  0x3e   : > { %s614_s15 = sshll.u32 %s268_s12, 4  ;;  %s1204_s15 = int_to_ptr.vmem [resolvable:$true] %s614_s15 }
  0x3f   : > { %vm1139_vm5 = vcmp.le.s32.totalorder %v324_v27, 14  ;;  %vm1143_vm6 = vcmp.ge.s32.totalorder %v324_v27, 1 }
  0xaa   : > { %v300_v2 = vpop.permute.xlu0 %299 }
  0xab   : > { %v1113_v3 = vsel %vm303_vm0, 0.0, %v300_v2 }
  0xac   : > { %366 = vrot.lane.b32.xlu1 %v1113_v3, %s955_s16  ;;  %379 = vrot.lane.b32.xlu0 %v1113_v3, %s956_s17  ;;  %v418_v8 = vrot.slane %v1113_v3, 6  ;;  %v467_v16 = vrot.slane %v1113_v3, 2  ;;  %v345_v38 = vsel %vm1131_vm1, %v1113_v3, 0.0 }
  0xae   : > { %v302_v4 = vpop.permute.xlu0 %301 }
  0xaf   : > { %v1117_v5 = vsel %vm303_vm0, %v300_v2, %v302_v4  ;;  %v309_v6 = vsel %vm303_vm0, %v302_v4, 0.0  ;;  %vm497_vm0 = vcmask 146432  }
  0xb0   : > { %444 = vrot.lane.b32.xlu1 %v1113_v3, %s957_s30  ;;  %353 = vrot.lane.b32.xlu0 %v1113_v3, %s958_s18  ;;  %v820_v7 = vpack.i.bf16 %v309_v6, %v1117_v5  ;;  %v419_v9 = vrot.slane %v1117_v5, 6  ;;  %v420_v10 = vrot.slane %v309_v6, 6  ;;  %v468_v12 = vrot.slane %v1117_v5, 2 }
  0xb1   : > { %v469_v13 = vrot.slane %v309_v6, 2  ;;  %v346_v47 = vsel %vm1143_vm6, %v1117_v5, 0.0 }
  0xb2   : > { %v845_v11 = vpack.i.bf16 %v420_v10, %v419_v9 }
  0xb3   : > { %v850_v14 = vpack.i.bf16 %v469_v13, %v468_v12 }
  0xb4   : > { %392 = vrot.lane.b32.xlu0 %v1113_v3, %s959_s24  ;;  %821 = vrot.lane.b32.xlu1 %v820_v7, %s956_s17  ;;  %s592_s17 = scalar_lea.sflag [#allocation4], %s1105_s13 }
  0xb8   : > { %421 = vrot.lane.b32.xlu0 %v418_v8, %s960_s26  ;;  %826 = vrot.lane.b32.xlu1 %v820_v7, %s958_s18  ;;  %s964_s18 = smov [#allocation5]  }
  0xbc   : > { %831 = vrot.lane.b32.xlu1 %v820_v7, %s959_s24  ;;  %846 = vrot.lane.b32.xlu0 %v845_v11, %s960_s26  ;;  %s889_s24 = sshll.u32 %s964_s18, 4  ;;  %s890_s24 = int_to_ptr.vmem [resolvable:$false] %s889_s24 }
  0xbd   : > { %s891_s26 = scalar_lea.vmem %s890_s24, 512  ;;  %p892_p7 = scmp.lt.s32.totalorder %s1204_s15, %s890_s24 }
  0xc0   : > { %836 = vrot.lane.b32.xlu1 %v820_v7, %s955_s16  ;;  %851 = vrot.lane.b32.xlu0 %v850_v14, %s961_s27  ;;  %s612_s16 = scalar_lea.hbm %s1257_s4, %s759_s19 }
  0xc4   : > { %841 = vrot.lane.b32.xlu1 %v820_v7, %s957_s30  ;;  %407 = vrot.lane.b32.xlu0 %v1117_v5, %s962_s29  ;;  %s885_s30 = scalar_lea.vmem %s1204_s15, 256 }
  0xc5   : > { %p886_p6 = scmp.ne.s32.totalorder %s1204_s15, %s885_s30  ;;  %p893_p10 = scmp.lt.s32.totalorder %s891_s26, %s885_s30 }
  0xc7   : > { %p887_p12 = pnand %p886_p6, %p1276_p11  ;;  %p894_p2 = por %p893_p10, %p892_p7 }
  0xc8   : > { %470 = vrot.lane.b32.xlu1 %v467_v16, %s961_s27  ;;  %405 = vrot.lane.b32.xlu0 %v1113_v3, %s962_s29 }
  0xc9   : > { %p888_p13 = pneg %p887_p12 }
  0xcb   : > { %p895_p4 = pnand %p894_p2, %p888_p13 }
  0xcc   : > { %409 = vrot.lane.b32.xlu1 %v309_v6, %s962_s29 }
 0x11e   : > { %v367_v17 = vpop.permute.xlu1 %366  ;;  %v380_v18 = vpop.permute.xlu0 %379 }
 0x122   : > { %v1129_v20 = vpop.permute.xlu1 %444  ;;  %v354_v21 = vpop.permute.xlu0 %353 }
 0x126   : > { %v822_v24 = vpop.permute.xlu1 %821  ;;  %v393_v25 = vpop.permute.xlu0 %392 }
 0x127   : > { %v824_v28 = vunpack.i.h.bf16 %v822_v24  ;;  %v823_v29 = vunpack.i.l.bf16 %v822_v24 }
 0x129   : > { %v386_v39 = vsel %vm385_vm2, %v380_v18, %v823_v29  ;;  %v387_v40 = vsel %vm385_vm2, %v823_v29, %v824_v28 }
 0x12a   : > { %v827_v30 = vpop.permute.xlu1 %826  ;;  %v422_v31 = vpop.permute.xlu0 %421  ;;  %v390_v50 = vsel %vm1135_vm4, %v386_v39, 0.0  ;;  %v391_v51 = vsel %vm1139_vm5, %v387_v40, 0.0 }
 0x12b   : > { %v829_v36 = vunpack.i.h.bf16 %v827_v30  ;;  %v828_v37 = vunpack.i.l.bf16 %v827_v30  ;;  %v457_v61 = vrot.slane %v390_v50, 6  ;;  %v458_v63 = vrot.slane %v391_v51, 6 }
 0x12d   : > { %v360_v48 = vsel %vm359_vm3, %v354_v21, %v828_v37  ;;  %v361_v49 = vsel %vm359_vm3, %v828_v37, %v829_v36 }
 0x12e   : > { %v832_v41 = vpop.permute.xlu1 %831  ;;  %v847_v42 = vpop.permute.xlu0 %846  ;;  %v364_v60 = vsel %vm1135_vm4, %v360_v48, 0.0  ;;  %v365_v62 = vsel %vm1139_vm5, %v361_v49, 0.0 }
 0x12f   : > { %v834_v43 = vunpack.i.h.bf16 %v832_v41  ;;  %v833_v44 = vunpack.i.l.bf16 %v832_v41  ;;  %v849_v45 = vunpack.i.h.bf16 %v847_v42  ;;  %v848_v46 = vunpack.i.l.bf16 %v847_v42 }
 0x130   : > { %v434_v14 = vrot.slane %v364_v60, 4  ;;  %v435_v15 = vrot.slane %v365_v62, 4 }
 0x131   : > { %v400_v52 = vsel %vm398_vm7, %v833_v44, %v834_v43  ;;  %v429_v53 = vsel %vm427_vm8, %v848_v46, %v849_v45  ;;  %v399_v56 = vsel %vm398_vm7, %v393_v25, %v833_v44  ;;  %v428_v57 = vsel %vm427_vm8, %v422_v31, %v848_v46  ;;  %v496_v44 = vld [vmem:[%s1254_s1] sm:$0xff] }
 0x132   : > { %v837_v54 = vpop.permute.xlu1 %836  ;;  %v852_v55 = vpop.permute.xlu0 %851  ;;  %v404_v2 = vsel %vm1143_vm6, %v400_v52, 0.0  ;;  %v483_v3 = vsel %vm481_vm11, %v346_v47, %v429_v53  ;;  %v403_v7 = vsel %vm1131_vm1, %v399_v56, 0.0  ;;  %v482_v8 = vsel %vm481_vm11, %v345_v38, %v428_v57 }
 0x133   : > { %v839_v58 = vunpack.i.h.bf16 %v837_v54  ;;  %v838_v59 = vunpack.i.l.bf16 %v837_v54  ;;  %v854_v9 = vunpack.i.h.bf16 %v852_v55  ;;  %v853_v10 = vunpack.i.l.bf16 %v852_v55 }
 0x134   : > { %v464_v21 = vrot.slane %v404_v2, 4  ;;  %v463_v22 = vrot.slane %v403_v7, 4  ;;  %v486_v24 = vsel %vm484_vm12, %v483_v3, %v435_v15  ;;  %v485_v26 = vsel %vm484_vm12, %v482_v8, %v434_v14 }
 0x135   : > { %v373_v0 = vsel %vm372_vm9, %v367_v17, %v838_v59  ;;  %v374_v1 = vsel %vm372_vm9, %v838_v59, %v839_v58  ;;  %v478_v29 = vsel %vm476_vm13, %v853_v10, %v854_v9 }
 0x136   : > { %v842_v4 = vpop.permute.xlu1 %841  ;;  %v378_v5 = vsel %vm1143_vm6, %v374_v1, 0.0  ;;  %v377_v6 = vsel %vm1131_vm1, %v373_v0, 0.0  ;;  %v408_v13 = vpop.permute.xlu0 %407 }
 0x137   : > { %v844_v11 = vunpack.i.h.bf16 %v842_v4  ;;  %v843_v12 = vunpack.i.l.bf16 %v842_v4  ;;  %v441_v16 = vrot.slane %v378_v5, 2  ;;  %v440_v17 = vrot.slane %v377_v6, 2 }
 0x139   : > { %v451_v18 = vsel %vm450_vm10, %v1129_v20, %v843_v12  ;;  %v452_v19 = vsel %vm450_vm10, %v843_v12, %v844_v11  ;;  %v489_v31 = vsel %vm487_vm14, %v486_v24, %v441_v16  ;;  %v488_v35 = vsel %vm487_vm14, %v485_v26, %v440_v17 }
 0x13a   : > { %v471_v23 = vpop.permute.xlu1 %470  ;;  %v491_v25 = vsel %vm481_vm11, %v452_v19, %v458_v63  ;;  %v490_v27 = vsel %vm481_vm11, %v451_v18, %v457_v61  ;;  %v406_v37 = vpop.permute.xlu0 %405 }
 0x13b   : > { %v477_v28 = vsel %vm476_vm13, %v471_v23, %v853_v10  ;;  %v493_v30 = vsel %vm484_vm12, %v491_v25, %v464_v21  ;;  %v492_v20 = vsel %vm484_vm12, %v490_v27, %v463_v22  ;;  %v412_v42 = vsel %vm411_vm15, %v406_v37, %v408_v13 }
 0x13c   : > { %v495_v32 = vsel %vm487_vm14, %v493_v30, %v478_v29  ;;  %v494_v36 = vsel %vm487_vm14, %v492_v20, %v477_v28  ;;  %v416_v45 = vsel %vm1135_vm4, %v412_v42, 0.0 }
 0x13d   : > { %v760_v38 = vpack.c.bf16 %v495_v32, %v489_v31  ;;  %v762_v39 = vpack.c.bf16 %v494_v36, %v488_v35 }
 0x13e   : > { %v410_v40 = vpop.permute.xlu1 %409 }
 0x13f   : > { %v413_v41 = vsel %vm411_vm15, %v408_v13, %v410_v40  ;;  %761 = vmatprep.subr.bf16.mxu0 %v760_v38 }
 0x140   : > { %v417_v43 = vsel %vm1139_vm5, %v413_v41, 0.0  ;;  %763 = vmatpush1.bf16.msra.mxu0 %v762_v39 }
 0x141   : > { %750 = vmatprep.subr.msk.mxu0 %vm481_vm11, %v417_v43 }
 0x144   : > { %751 = vmatpush1.msk.msra.mxu0 %vm481_vm11, %v416_v45 }
 0x145   : > { %752 = vmatmul.mubr.msk.f32.vlgmr.msra.gmra.mrb[0].mxu0 %vm497_vm0, %v496_v44 }
 0x218   : > { %v573_v46 = vpop.f32.mrb[0].mxu0 }
 0x219   : > { %578 = vst [vmem:[%s268_s12] sm:$0xff] %v573_v46  ;;  %v575_v34 = vpop.f32.mrb[1].mxu0  ;;  %v585_v47 = vmul.f32 %v573_v46, %v573_v46 }
 0x21a   : > { %579 = vst [vmem:[%s268_s12 + $0x8] sm:$0xff] %v575_v34  ;;  %v586_v48 = vmul.f32 %v575_v34, %v575_v34  ;;  %v580_v49 = vadd.f32 %v575_v34, %v573_v46 }
 0x21c   : > { %581 = vadd.xlane.f32.xlu1 %v580_v49  ;;  %v587_v50 = vadd.f32 %v586_v48, %v585_v47 }
 0x21e   : > { %588 = vadd.xlane.f32.xlu0 %v587_v50 }
 0x21f   : > { %898 = shalt.err (!%p895_p4)
}
 0x220   : > { %s899_s27 = scalar_lea.hbm %s612_s16, 256  ;;  %s903_s9 = scalar_lea.hbm %s1257_s4, 512 }
 0x221   : > { %p900_p5 = scmp.ne.s32.totalorder %s612_s16, %s899_s27  ;;  %p904_p0 = scmp.lt.u32.totalorder %s612_s16, %s1257_s4 }
 0x222   : > { %p905_p1 = scmp.lt.u32.totalorder %s903_s9, %s899_s27  ;;  %p907_p6 = scmp.lt.u32.totalorder %s899_s27, %s612_s16 }
 0x223   : > { %p901_p8 = pnand %p900_p5, %p1276_p11 }
 0x224   : > { %p906_p3 = por %p905_p1, %p904_p0 }
 0x225   : > { %p902_p9 = pneg %p901_p8 }
 0x226   : > { %p908_p12 = por %p907_p6, %p906_p3 }
 0x228   : > { %p909_p13 = pnand %p908_p12, %p902_p9 }
 0x22a   : > { %912 = shalt.err (!%p909_p13)
}
 0x22b   : > { %766 = dma.vmem_to_hbm [thread:$0]  (%p1276_p11), %s1204_s15, 256, %s612_s16, %s592_s17   ;;  %vm583_vm1 = vcmask 7168  }
 0x22c   : > { %p281_p7 = scmp.lt.s32.totalorder %s1021_s23, 1 }
 0x22e   : > { %s1284_s23 = smov (!%p281_p7, %s1021_s23), 1 }
 0x22f   : > { %s747_s12 = sshll.u32 %s1284_s23, 3 }
 0x230   : > { %s284_s14 = scalar_lea.vmem %s1258_s5, %s747_s12  ;;  %s288_s24 = scalar_lea.vmem %s1259_s6, %s747_s12 }
 0x2a9   : > { %v582_v33 = vpop.xlane.xlu1 %581 }
 0x2aa   : > { %584 = vst.msk [vmem:[%s284_s14] sm:$0xff] %vm583_vm1, %v582_v33 }
 0x2ab   : > { %v589_v51 = vpop.xlane.xlu0 %588 }
 0x2ac   : > { %590 = vst.msk [vmem:[%s288_s24] sm:$0xff] %vm583_vm1, %v589_v51 }
 0x2ad PF: > { %s632_s7 = sand.u32 1, %s939_s21   ;;  %p1277_p11 = scmp.ne.s32.totalorder %s1264_s8, 0 }
 0x2ae   : > { %p1278_p10 = scmp.ge.s32.totalorder %s951_s3, 2  ;;  %s633_s23 = scalar_lea.sflag [#allocation4], %s632_s7 }
 0x2b0   : > { %p773_p2 = pnand %p1278_p10, %p1277_p11 }
 0x2b2   : > { %934 = dma.done.wait (!%p773_p2), %s633_s23, 256  }
 0x2b3   : > { %936 = vsyncadd (!%p773_p2), %s633_s23, 4294967040  ;;  %p20_p4 = scmp.ge.s32.totalorder %s1025_s25, 4   ;;  %s1279_s21 = smov %s943_s22 }
 0x2b4   : > { %s1280_s22 = smov %s947_s2  ;;  %s1281_s2 = smov %s1037_s28 }
 0x2b5   : > { %s1282_s3 = smov %s1025_s25  ;;  %22 = sbr.rel (!%p20_p4) target bundleno = 5 (0x5), region = 105 }
 0x2bc   :  { %652 = vsyncpa [#allocation3], 1 }
 0x2bd   :  { %654 = vsyncpa [#allocation3 + $0x1], 1 }
 0x2be   :  { %655 = vsyncpa [#allocation4], 1 }
 0x2bf   :  { %657 = vsyncpa [#allocation4 + $0x1], 1 }

</bundles_post_ra>
